<compile_context>
chip_gen: v7x
topology: tpu7x:2x2x1
jax: 0.10.0
libtpu: 0.0.40
codegen_flags: <defaults>
</compile_context>

<pallas_src>
import functools

import jax
import jax.numpy as jnp
from jax.experimental import pallas as pl
from jax.experimental.pallas import tpu as pltpu

LANE = 128


def _round_up(x, m):
    return ((x + m - 1) // m) * m


def _choose_tile_b(batch):
    """Batch tile: big enough to amortize per-grid-step overhead, but >= 2 grid
    steps once batch >= 48 (v7x megacore sharding). Capped at 2048 rows."""
    b16 = _round_up(batch, 16)
    if b16 <= 32:
        return b16                            # too small to split usefully
    half = _round_up((b16 + 1) // 2, 16)      # exactly 2 steps for mid batches
    return min(half, 2048)                    # many fat steps for huge batches


def fc2_base_kernel(x_ref, w1_ref, b1_ref, w2_ref, b2_ref, w3_ref, b3_ref,
                    o_ref, *, num_classes):
    x = x_ref[...]                                                  # bf16 [tb, in_k]

    # fc1 + ReLU (MXU bf16, f32 accumulation; elementwise in f32)
    h1 = jnp.dot(x, w1_ref[...], preferred_element_type=jnp.float32) + b1_ref[...]
    h1 = jnp.maximum(h1, 0.0)

    # fc2 + ReLU
    h2 = jnp.dot(h1.astype(jnp.bfloat16), w2_ref[...],
                 preferred_element_type=jnp.float32) + b2_ref[...]
    h2 = jnp.maximum(h2, 0.0)

    # fc3
    logits = jnp.dot(h2.astype(jnp.bfloat16), w3_ref[...],
                     preferred_element_type=jnp.float32) + b3_ref[...]

    # Mask padded class columns so they don't corrupt the normalizer.
    lane = jax.lax.broadcasted_iota(jnp.int32, logits.shape, 1)
    logits = jnp.where(lane < num_classes, logits, jnp.float32(-1e30))

    # Numerically-stable log_softmax over the class (lane) axis.
    m = jnp.max(logits, axis=-1, keepdims=True)
    shifted = logits - m
    lse = jnp.log(jnp.sum(jnp.exp(shifted), axis=-1, keepdims=True))
    o_ref[...] = shifted - lse


def make_fc2_base_forward(params):
    """Pads + bf16-casts the parameters ONCE and returns a jitted forward fn."""
    w1, b1, w2, b2, w3, b3 = params          # native (unpadded) f32 shapes
    in_layer = w1.shape[0]
    h1_dim, h2_dim, num_classes = w1.shape[1], w2.shape[1], w3.shape[1]

    in_k = _round_up(in_layer, 16)           # minimal K pad (bf16 sublane packing)
    h1_pad = _round_up(h1_dim, LANE)         # 50  -> 128
    h2_pad = _round_up(h2_dim, LANE)         # 100 -> 128
    c_pad = _round_up(num_classes, LANE)     # 10  -> 128

    # Hoisted out of the per-call path (weights never change between calls).
    w1p = jnp.pad(w1, ((0, in_k - in_layer), (0, h1_pad - h1_dim))).astype(jnp.bfloat16)
    b1p = jnp.pad(b1, ((0, 0), (0, h1_pad - h1_dim))).astype(jnp.float32)
    w2p = jnp.pad(w2, ((0, h1_pad - h1_dim), (0, h2_pad - h2_dim))).astype(jnp.bfloat16)
    b2p = jnp.pad(b2, ((0, 0), (0, h2_pad - h2_dim))).astype(jnp.float32)
    w3p = jnp.pad(w3, ((0, h2_pad - h2_dim), (0, c_pad - num_classes))).astype(jnp.bfloat16)
    b3p = jnp.pad(b3, ((0, 0), (0, c_pad - num_classes))).astype(jnp.float32)

    kernel = functools.partial(fc2_base_kernel, num_classes=num_classes)

    @jax.jit
    def forward(x):
        B = x.shape[0]
        tile_b = _choose_tile_b(B)
        b_pad = _round_up(B, tile_b)

        # x.float() -> bf16 directly; only batch + tiny 16-wide K padding in HBM.
        xp = jnp.pad(x.astype(jnp.bfloat16),
                     ((0, b_pad - B), (0, in_k - in_layer)))

        grid = (b_pad // tile_b,)
        full = lambda i: (0, 0)              # weights/biases: one resident block

        flops = 2 * b_pad * (in_k * h1_pad + h1_pad * h2_pad + h2_pad * c_pad)
        bytes_accessed = (xp.size * 2 + b_pad * c_pad * 4
                          + (w1p.size + w2p.size + w3p.size) * 2
                          + (b1p.size + b2p.size + b3p.size) * 4)
        cost = pl.CostEstimate(flops=flops, transcendentals=b_pad * c_pad,
                               bytes_accessed=bytes_accessed)

        out = pl.pallas_call(
            kernel,
            out_shape=jax.ShapeDtypeStruct((b_pad, c_pad), jnp.float32),
            grid_spec=pltpu.PrefetchScalarGridSpec(
                num_scalar_prefetch=0,
                grid=grid,
                in_specs=[
                    pl.BlockSpec((tile_b, in_k), lambda i: (i, 0)),   # x tile
                    pl.BlockSpec(w1p.shape, full),
                    pl.BlockSpec(b1p.shape, full),
                    pl.BlockSpec(w2p.shape, full),
                    pl.BlockSpec(b2p.shape, full),
                    pl.BlockSpec(w3p.shape, full),
                    pl.BlockSpec(b3p.shape, full),
                ],
                out_specs=pl.BlockSpec((tile_b, c_pad), lambda i: (i, 0)),
            ),
            compiler_params=pltpu.CompilerParams(
                dimension_semantics=("parallel",),
                vmem_limit_bytes=32 * 1024 * 1024),
            cost_estimate=cost,
        )(xp, w1p, b1p, w2p, b2p, w3p, b3p)

        # Strip the batch / class padding (fused under the same jit).
        return out[:B, :num_classes]

    return forward


def init_params(key, in_layer, num_classes):
    """Deterministic init mimicking nn.Linear's uniform(-1/sqrt(fan_in), ...)."""
    dims = [(in_layer, 50), (50, 100), (100, num_classes)]
    params = []
    for fan_in, fan_out in dims:
        key, kw, kb = jax.random.split(key, 3)
        bound = 1.0 / jnp.sqrt(jnp.float32(fan_in))
        w = jax.random.uniform(kw, (fan_in, fan_out), jnp.float32, -bound, bound)
        b = jax.random.uniform(kb, (1, fan_out), jnp.float32, -bound, bound)
        params.extend([w, b])
    return tuple(params)


def _reference(x, params):
    """Pure-JAX f32 reference of the PyTorch forward."""
    w1, b1, w2, b2, w3, b3 = params
    h = jnp.maximum(x.astype(jnp.float32) @ w1 + b1, 0.0)
    h = jnp.maximum(h @ w2 + b2, 0.0)
    logits = h @ w3 + b3
    return jax.nn.log_softmax(logits, axis=1)


if __name__ == "__main__":
    B, in_layer, num_classes = 8, 32, 10
    key = jax.random.PRNGKey(0)
    kx, kp = jax.random.split(key)
    x = jax.random.normal(kx, (B, in_layer), jnp.float32)
    params = init_params(kp, in_layer, num_classes)

    forward = make_fc2_base_forward(params)
    out = jax.block_until_ready(forward(x))

    assert out.shape == (B, num_classes)
    # log_softmax rows must (log-)sum to ~0
    row_sums = jnp.sum(jnp.exp(out), axis=1)
    assert bool(jnp.all(jnp.abs(row_sums - 1.0) < 1e-4))
    # match the f32 reference within bf16-matmul tolerance
    ref = _reference(x, params)
    assert bool(jnp.all(jnp.abs(out - ref) < 5e-2))
    print("KERNEL_OK")
</pallas_src>

<mosaic_0001>
module attributes {stable_mosaic.version = 11 : i64} {
  func.func @fc2_base_kernel(%arg0: i32, %arg1: memref<16x32xbf16, #tpu.memory_space<vmem>>, %arg2: memref<32x128xbf16, #tpu.memory_space<vmem>>, %arg3: memref<1x128xf32, #tpu.memory_space<vmem>>, %arg4: memref<128x128xbf16, #tpu.memory_space<vmem>>, %arg5: memref<1x128xf32, #tpu.memory_space<vmem>>, %arg6: memref<128x128xbf16, #tpu.memory_space<vmem>>, %arg7: memref<1x128xf32, #tpu.memory_space<vmem>>, %arg8: memref<16x128xf32, #tpu.memory_space<vmem>>) attributes {dimension_semantics = [#tpu.dimension_semantics<parallel>], iteration_bounds = array<i64: 1>, scalar_prefetch = 0 : i64, scratch_operands = 0 : i64, tpu.core_type = #tpu.core_type<tc>, window_params = [{transform_indices = @transform_0, window_bounds = array<i64: 16, 32>}, {pipeline_mode = #tpu.pipeline_mode<synchronous>, transform_indices = @transform_1, window_bounds = array<i64: 32, 128>}, {pipeline_mode = #tpu.pipeline_mode<synchronous>, transform_indices = @transform_2, window_bounds = array<i64: 1, 128>}, {pipeline_mode = #tpu.pipeline_mode<synchronous>, transform_indices = @transform_3, window_bounds = array<i64: 128, 128>}, {pipeline_mode = #tpu.pipeline_mode<synchronous>, transform_indices = @transform_4, window_bounds = array<i64: 1, 128>}, {pipeline_mode = #tpu.pipeline_mode<synchronous>, transform_indices = @transform_5, window_bounds = array<i64: 128, 128>}, {pipeline_mode = #tpu.pipeline_mode<synchronous>, transform_indices = @transform_6, window_bounds = array<i64: 1, 128>}, {transform_indices = @transform_7, window_bounds = array<i64: 16, 128>}]} {
    %c0 = arith.constant 0 : index
    %c0_0 = arith.constant 0 : index
    %0 = vector.load %arg1[%c0, %c0_0] : memref<16x32xbf16, #tpu.memory_space<vmem>>, vector<16x32xbf16>
    %c0_1 = arith.constant 0 : index
    %c0_2 = arith.constant 0 : index
    %1 = vector.load %arg2[%c0_1, %c0_2] : memref<32x128xbf16, #tpu.memory_space<vmem>>, vector<32x128xbf16>
    %cst = arith.constant dense<0.000000e+00> : vector<16x128xf32>
    %2 = tpu.matmul %0, %1, %cst {dimension_numbers = #tpu.dot_dimension_numbers<[1], [0], [0], [1], [0, 0, 1, 1], [], []>} : vector<16x32xbf16>, vector<32x128xbf16>, vector<16x128xf32> -> vector<16x128xf32>
    %c0_3 = arith.constant 0 : index
    %c0_4 = arith.constant 0 : index
    %3 = vector.load %arg3[%c0_3, %c0_4] : memref<1x128xf32, #tpu.memory_space<vmem>>, vector<1x128xf32>
    %4 = vector.broadcast %3 : vector<1x128xf32> to vector<16x128xf32>
    %5 = arith.addf %2, %4 : vector<16x128xf32>
    %cst_5 = arith.constant 0.000000e+00 : f32
    %6 = vector.broadcast %cst_5 : f32 to vector<16x128xf32>
    %7 = arith.maximumf %5, %6 : vector<16x128xf32>
    %8 = arith.truncf %7 : vector<16x128xf32> to vector<16x128xbf16>
    %c0_6 = arith.constant 0 : index
    %c0_7 = arith.constant 0 : index
    %9 = vector.load %arg4[%c0_6, %c0_7] : memref<128x128xbf16, #tpu.memory_space<vmem>>, vector<128x128xbf16>
    %cst_8 = arith.constant dense<0.000000e+00> : vector<16x128xf32>
    %10 = tpu.matmul %8, %9, %cst_8 {dimension_numbers = #tpu.dot_dimension_numbers<[1], [0], [0], [1], [0, 0, 1, 1], [], []>} : vector<16x128xbf16>, vector<128x128xbf16>, vector<16x128xf32> -> vector<16x128xf32>
    %c0_9 = arith.constant 0 : index
    %c0_10 = arith.constant 0 : index
    %11 = vector.load %arg5[%c0_9, %c0_10] : memref<1x128xf32, #tpu.memory_space<vmem>>, vector<1x128xf32>
    %12 = vector.broadcast %11 : vector<1x128xf32> to vector<16x128xf32>
    %13 = arith.addf %10, %12 : vector<16x128xf32>
    %cst_11 = arith.constant 0.000000e+00 : f32
    %14 = vector.broadcast %cst_11 : f32 to vector<16x128xf32>
    %15 = arith.maximumf %13, %14 : vector<16x128xf32>
    %16 = arith.truncf %15 : vector<16x128xf32> to vector<16x128xbf16>
    %c0_12 = arith.constant 0 : index
    %c0_13 = arith.constant 0 : index
    %17 = vector.load %arg6[%c0_12, %c0_13] : memref<128x128xbf16, #tpu.memory_space<vmem>>, vector<128x128xbf16>
    %cst_14 = arith.constant dense<0.000000e+00> : vector<16x128xf32>
    %18 = tpu.matmul %16, %17, %cst_14 {dimension_numbers = #tpu.dot_dimension_numbers<[1], [0], [0], [1], [0, 0, 1, 1], [], []>} : vector<16x128xbf16>, vector<128x128xbf16>, vector<16x128xf32> -> vector<16x128xf32>
    %c0_15 = arith.constant 0 : index
    %c0_16 = arith.constant 0 : index
    %19 = vector.load %arg7[%c0_15, %c0_16] : memref<1x128xf32, #tpu.memory_space<vmem>>, vector<1x128xf32>
    %20 = vector.broadcast %19 : vector<1x128xf32> to vector<16x128xf32>
    %21 = arith.addf %18, %20 : vector<16x128xf32>
    %22 = tpu.iota {dimensions = array<i32: 1>} : vector<16x128xi32>
    %c10_i32 = arith.constant 10 : i32
    %23 = vector.broadcast %c10_i32 : i32 to vector<16x128xi32>
    %24 = arith.cmpi slt, %22, %23 : vector<16x128xi32>
    %cst_17 = arith.constant -1.000000e+30 : f32
    %25 = vector.broadcast %cst_17 : f32 to vector<16x128xf32>
    %26 = arith.select %24, %21, %25 : vector<16x128xi1>, vector<16x128xf32>
    %cst_18 = arith.constant dense<0xFF800000> : vector<16xf32>
    %27 = vector.multi_reduction <maximumf>, %26, %cst_18 [1] : vector<16x128xf32> to vector<16xf32>
    %28 = vector.shape_cast %27 : vector<16xf32> to vector<16x1xf32>
    %29 = vector.broadcast %28 : vector<16x1xf32> to vector<16x128xf32>
    %30 = arith.subf %26, %29 : vector<16x128xf32>
    %31 = math.exp %30 : vector<16x128xf32>
    %cst_19 = arith.constant dense<0.000000e+00> : vector<16xf32>
    %32 = vector.multi_reduction <add>, %31, %cst_19 [1] : vector<16x128xf32> to vector<16xf32>
    %33 = vector.shape_cast %32 : vector<16xf32> to vector<16x1xf32>
    %34 = math.log %33 : vector<16x1xf32>
    %35 = vector.broadcast %34 : vector<16x1xf32> to vector<16x128xf32>
    %36 = arith.subf %30, %35 : vector<16x128xf32>
    %c0_20 = arith.constant 0 : index
    %c0_21 = arith.constant 0 : index
    %37 = vector.load %arg8[%c0_20, %c0_21] : memref<16x128xf32, #tpu.memory_space<vmem>>, vector<16x128xf32>
    tpu.vector_store %arg8[%c0_20, %c0_21], %36 {strides = array<i32>} : memref<16x128xf32, #tpu.memory_space<vmem>>, vector<16x128xf32>,
    return
  }
  func.func @transform_0(%arg0: i32) -> (i32, i32) {
    %c0_i32 = arith.constant 0 : i32
    %c0_i32_0 = arith.constant 0 : i32
    return %arg0, %c0_i32 : i32, i32
  }
  func.func @transform_1(%arg0: i32) -> (i32, i32) {
    %c0_i32 = arith.constant 0 : i32
    %c0_i32_0 = arith.constant 0 : i32
    %c0_i32_1 = arith.constant 0 : i32
    return %c0_i32, %c0_i32_0 : i32, i32
  }
  func.func @transform_2(%arg0: i32) -> (i32, i32) {
    %c0_i32 = arith.constant 0 : i32
    %c0_i32_0 = arith.constant 0 : i32
    %c0_i32_1 = arith.constant 0 : i32
    return %c0_i32, %c0_i32_0 : i32, i32
  }
  func.func @transform_3(%arg0: i32) -> (i32, i32) {
    %c0_i32 = arith.constant 0 : i32
    %c0_i32_0 = arith.constant 0 : i32
    %c0_i32_1 = arith.constant 0 : i32
    return %c0_i32, %c0_i32_0 : i32, i32
  }
  func.func @transform_4(%arg0: i32) -> (i32, i32) {
    %c0_i32 = arith.constant 0 : i32
    %c0_i32_0 = arith.constant 0 : i32
    %c0_i32_1 = arith.constant 0 : i32
    return %c0_i32, %c0_i32_0 : i32, i32
  }
  func.func @transform_5(%arg0: i32) -> (i32, i32) {
    %c0_i32 = arith.constant 0 : i32
    %c0_i32_0 = arith.constant 0 : i32
    %c0_i32_1 = arith.constant 0 : i32
    return %c0_i32, %c0_i32_0 : i32, i32
  }
  func.func @transform_6(%arg0: i32) -> (i32, i32) {
    %c0_i32 = arith.constant 0 : i32
    %c0_i32_0 = arith.constant 0 : i32
    %c0_i32_1 = arith.constant 0 : i32
    return %c0_i32, %c0_i32_0 : i32, i32
  }
  func.func @transform_7(%arg0: i32) -> (i32, i32) {
    %c0_i32 = arith.constant 0 : i32
    %c0_i32_0 = arith.constant 0 : i32
    return %arg0, %c0_i32 : i32, i32
  }
}

</mosaic_0001>

<bundles_post_ra>
// kernel: forward.1
= control target key start
LH: loop header
LB: loop body
LE: loop exit
PB: predicated region body
PF: predicated region fallthrough
CT: control target
= control target key end

     0   :  { %12 = vsyncpa [#allocation3], 0  ;;  %s684_s0 = inlined_call_operand.vmem [shape: bf16[16,32], index: 0, kind: input, shape index: {}]   ;;  %s685_s1 = inlined_call_operand.vmem [shape: bf16[32,128], index: 1, kind: input, shape index: {}]   ;;  %s686_s2 = inlined_call_operand.vmem [shape: f32[1,128], index: 2, kind: input, shape index: {}]   ;;  %s687_s3 = inlined_call_operand.hbm [shape: bf16[128,128], index: 3, kind: input, shape index: {}]   ;;  %s688_s4 = inlined_call_operand.vmem [shape: f32[1,128], index: 4, kind: input, shape index: {}]   ;;  %s689_s5 = inlined_call_operand.hbm [shape: bf16[128,128], index: 5, kind: input, shape index: {}]   ;;  %s690_s6 = inlined_call_operand.vmem [shape: f32[1,128], index: 6, kind: input, shape index: {}]   ;;  %s691_s7 = inlined_call_operand.vmem [shape: f32[16,128], index: 7, kind: output, shape index: {}]  }
   0x1   :  { %13 = vsyncpa [#allocation5], 0  ;;  %s566_s24 = smov [#allocation2]   ;;  %s518_s28 = scalar_lea.hbm %s687_s3, 1024 }
   0x2   :  { %s25_s25 = sshll.u32 %s566_s24, 4  ;;  %p519_p0 = scmp.ne.s32.totalorder %s687_s3, %s518_s28  ;;  %s26_s25 = int_to_ptr.vmem [resolvable:$true] %s25_s25 }
   0x3   :  { %p522_p1 = scmp.lt.u32.totalorder %s518_s28, %s687_s3 }
   0x5   :  { %p524_p2 = pnand %p522_p1, %p519_p0 }
   0x7   :  { %527 = shalt.err (!%p524_p2)
}
   0x8   :  { %s528_s10 = scalar_lea.vmem %s26_s25, 1024  ;;  %p533_p4 = scmp.lt.s32.totalorder %s26_s25, %s26_s25 }
   0x9   :  { %p529_p3 = scmp.ne.s32.totalorder %s26_s25, %s528_s10  ;;  %p534_p5 = scmp.lt.s32.totalorder %s528_s10, %s528_s10 }
   0xb   :  { %p535_p6 = por %p534_p5, %p533_p4 }
   0xd   :  { %p536_p7 = pnand %p535_p6, %p529_p3 }
   0xf   :  { %539 = shalt.err (!%p536_p7)
}
  0x10   :  { %s567_s11 = smov 64   ;;  %s568_s12 = smov 4  }
  0x11   :  { %31 = dma.hbm_to_vmem [thread:$0]  %s687_s3, 1024, %s26_s25, [#allocation3], %s567_s11, %s567_s11, %s568_s12  }
  0x12   :  { %s569_s15 = smov [#allocation4]   ;;  %s540_s19 = scalar_lea.hbm %s689_s5, 1024 }
  0x13   :  { %s39_s16 = sshll.u32 %s569_s15, 4  ;;  %p541_p8 = scmp.ne.s32.totalorder %s689_s5, %s540_s19  ;;  %s40_s16 = int_to_ptr.vmem [resolvable:$true] %s39_s16 }
  0x14   :  { %p544_p9 = scmp.lt.u32.totalorder %s540_s19, %s689_s5 }
  0x16   :  { %p546_p10 = pnand %p544_p9, %p541_p8 }
  0x18   :  { %549 = shalt.err (!%p546_p10)
}
  0x19   :  { %s550_s24 = scalar_lea.vmem %s40_s16, 1024  ;;  %p555_p12 = scmp.lt.s32.totalorder %s40_s16, %s40_s16 }
  0x1a   :  { %p551_p11 = scmp.ne.s32.totalorder %s40_s16, %s550_s24  ;;  %p556_p13 = scmp.lt.s32.totalorder %s550_s24, %s550_s24 }
  0x1c   :  { %p557_p0 = por %p556_p13, %p555_p12 }
  0x1e   :  { %p558_p1 = pnand %p557_p0, %p551_p11 }
  0x20   :  { %561 = shalt.err (!%p558_p1)
}
  0x21   :  { %45 = dma.hbm_to_vmem [thread:$0]  %s689_s5, 1024, %s40_s16, [#allocation5], %s567_s11, %s567_s11, %s568_s12  }
  0x22   :  { %562 = dma.done.wait [#allocation3], 1024  }
  0x23   :  { %563 = vsyncadd [#allocation3], 4294966272 }
  0x24   :  { %564 = dma.done.wait [#allocation5], 1024  }
  0x25   :  { %565 = vsyncadd [#allocation5], 4294966272  ;;  %v570_v0 = vmov 0.0   ;;  %vm571_vm0 = vmmov 0   ;;  %v491_v1 = vld [vmem:[%s685_s1] sm:$0xff]   ;;  %v492_v2 = vld [vmem:[%s685_s1 + $0x8] sm:$0xff]   ;;  %v360_v40 = vlaneseq }
  0x26   :  { %437 = vmatprep.subr.bf16.mxu0 %v570_v0  ;;  %441 = vmatprep.mubr.msk.bf16.mxu0 %vm571_vm0, %v570_v0  ;;  %v494_v3 = vld [vmem:[#allocation2] sm:$0xff]   ;;  %v495_v5 = vld [vmem:[#allocation2 + $0x8] sm:$0xff]   ;;  %vm85_vm1 = vcmask 261120   ;;  %v496_v6 = vld [vmem:[#allocation2 + $0x10] sm:$0xff]  }
  0x27   :  { %445 = vmatprep.subr.bf16.mxu1 %v570_v0  ;;  %461 = vmatprep.mubr.msk.bf16.mxu1 %vm571_vm0, %v570_v0  ;;  %v493_v4 = vld [vmem:[%s684_s0] sm:$0xff]   ;;  %v497_v7 = vld [vmem:[#allocation2 + $0x18] sm:$0xff]   ;;  %v499_v9 = vld [vmem:[#allocation2 + $0x28] sm:$0xff]   ;;  %v361_v41 = vand.u32 127, %v360_v40 }
  0x28   :  { %438 = vmatpush3.bf16.msra.mxu0 %v491_v1  ;;  %446 = vmatpush3.bf16.msra.mxu1 %v494_v3  ;;  %v498_v8 = vld [vmem:[#allocation2 + $0x20] sm:$0xff]   ;;  %v500_v10 = vld [vmem:[#allocation2 + $0x30] sm:$0xff]   ;;  %v501_v11 = vld [vmem:[#allocation2 + $0x38] sm:$0xff]  }
  0x29   :  { %439 = vmatprep.subr.bf16.mxu0 %v570_v0  ;;  %447 = vmatprep.subr.bf16.mxu1 %v570_v0  ;;  %v502_v12 = vld [vmem:[#allocation4] sm:$0xff]   ;;  %v503_v13 = vld [vmem:[#allocation4 + $0x8] sm:$0xff]   ;;  %v504_v14 = vld [vmem:[#allocation4 + $0x10] sm:$0xff]   ;;  %vm362_vm2 = vcmp.lt.s32.totalorder %v361_v41, 10 }
  0x2a   :  { %v505_v15 = vld [vmem:[#allocation4 + $0x18] sm:$0xff]   ;;  %v506_v16 = vld [vmem:[#allocation4 + $0x20] sm:$0xff]   ;;  %v507_v17 = vld [vmem:[#allocation4 + $0x28] sm:$0xff]  }
  0x2b   :  { %v393_v18 = vld [vmem:[%s686_s2] ss:$0 sm:$0xff]  ;;  %v508_v28 = vld [vmem:[#allocation4 + $0x30] sm:$0xff]   ;;  %v509_v29 = vld [vmem:[#allocation4 + $0x38] sm:$0xff]  }
  0x2c   :  { %440 = vmatpush3.bf16.msra.mxu0 %v492_v2  ;;  %448 = vmatpush3.bf16.msra.mxu1 %v495_v5  ;;  %v398_v30 = vld [vmem:[%s688_s4] ss:$0 sm:$0xff] }
  0x2d   :  { %465 = vmatprep.subr.bf16.mxu0 %v570_v0  ;;  %449 = vmatprep.subr.bf16.mxu1 %v570_v0  ;;  %v407_v42 = vld [vmem:[%s690_s6] ss:$0 sm:$0xff] }
  0x2f   :  { %442 = vmatmul.mubr.msk.bf16.vlgmr.msra.gmra.mrb[0].mxu0 %vm85_vm1, %v493_v4 }
  0x30   :  { %481 = vmatprep.mubr.msk.bf16.mxu0 %vm571_vm0, %v570_v0  ;;  %450 = vmatpush3.bf16.msra.mxu1 %v496_v6 }
  0x31   :  { %451 = vmatprep.subr.bf16.mxu1 %v570_v0  ;;  %466 = vmatpush3.bf16.msra.mxu0 %v502_v12 }
  0x32   :  { %467 = vmatprep.subr.bf16.mxu0 %v570_v0 }
  0x34   :  { %452 = vmatpush3.bf16.msra.mxu1 %v497_v7 }
  0x35   :  { %453 = vmatprep.subr.bf16.mxu1 %v570_v0  ;;  %468 = vmatpush3.bf16.msra.mxu0 %v503_v13 }
  0x36   :  { %469 = vmatprep.subr.bf16.mxu0 %v570_v0 }
  0x38   :  { %454 = vmatpush3.bf16.msra.mxu1 %v498_v8 }
  0x39   :  { %455 = vmatprep.subr.bf16.mxu1 %v570_v0  ;;  %470 = vmatpush3.bf16.msra.mxu0 %v504_v14 }
  0x3a   :  { %471 = vmatprep.subr.bf16.mxu0 %v570_v0 }
  0x3c   :  { %456 = vmatpush3.bf16.msra.mxu1 %v499_v9 }
  0x3d   :  { %457 = vmatprep.subr.bf16.mxu1 %v570_v0  ;;  %472 = vmatpush3.bf16.msra.mxu0 %v505_v15 }
  0x3e   :  { %473 = vmatprep.subr.bf16.mxu0 %v570_v0 }
  0x40   :  { %458 = vmatpush3.bf16.msra.mxu1 %v500_v10 }
  0x41   :  { %459 = vmatprep.subr.bf16.mxu1 %v570_v0  ;;  %474 = vmatpush3.bf16.msra.mxu0 %v506_v16 }
  0x42   :  { %475 = vmatprep.subr.bf16.mxu0 %v570_v0 }
  0x44   :  { %460 = vmatpush3.bf16.msra.mxu1 %v501_v11 }
  0x45   :  { %476 = vmatpush3.bf16.msra.mxu0 %v507_v17 }
  0x46   :  { %477 = vmatprep.subr.bf16.mxu0 %v570_v0 }
  0x49   :  { %478 = vmatpush3.bf16.msra.mxu0 %v508_v28 }
  0x4a   :  { %479 = vmatprep.subr.bf16.mxu0 %v570_v0 }
  0x4d   :  { %480 = vmatpush3.bf16.msra.mxu0 %v509_v29 }
 0x102   :  { %v123_v19 = vpop.f32.mrb[0].mxu0 }
 0x103   :  { %v124_v20 = vadd.f32 %v393_v18, %v123_v19  ;;  %v443_v21 = vpop.f32.mrb[1].mxu0 }
 0x104   :  { %v126_v22 = vpop.f32.mrb[2].mxu0 }
 0x105   :  { %v127_v23 = vadd.f32 %v393_v18, %v126_v22  ;;  %v444_v24 = vpop.f32.mrb[3].mxu0  ;;  %v130_v25 = vmax.f32 %v124_v20, 0.0 }
 0x107   :  { %v131_v26 = vmax.f32 %v127_v23, 0.0 }
 0x109   :  { %v132_v27 = vpack.c.bf16 %v131_v26, %v130_v25 }
 0x10b   :  { %462 = vmatmul.mubr.bf16.vlgmr.msra.gmra.mrb[0].mxu1 %v132_v27 }
 0x1de   :  { %v238_v31 = vpop.f32.mrb[0].mxu1 }
 0x1df   :  { %v239_v32 = vadd.f32 %v398_v30, %v238_v31  ;;  %v463_v33 = vpop.f32.mrb[1].mxu1 }
 0x1e0   :  { %v241_v34 = vpop.f32.mrb[2].mxu1 }
 0x1e1   :  { %v242_v35 = vadd.f32 %v398_v30, %v241_v34  ;;  %v464_v36 = vpop.f32.mrb[3].mxu1  ;;  %v245_v37 = vmax.f32 %v239_v32, 0.0 }
 0x1e3   :  { %v246_v38 = vmax.f32 %v242_v35, 0.0 }
 0x1e5   :  { %v247_v39 = vpack.c.bf16 %v246_v38, %v245_v37 }
 0x1e7   :  { %482 = vmatmul.mubr.bf16.vlgmr.msra.gmra.mrb[4].mxu0 %v247_v39 }
 0x2ba   :  { %v353_v43 = vpop.f32.mrb[4].mxu0 }
 0x2bb   :  { %v354_v44 = vadd.f32 %v407_v42, %v353_v43  ;;  %v483_v45 = vpop.f32.mrb[5].mxu0 }
 0x2bc   :  { %v356_v46 = vpop.f32.mrb[6].mxu0 }
 0x2bd   :  { %v357_v47 = vadd.f32 %v407_v42, %v356_v46  ;;  %v484_v48 = vpop.f32.mrb[7].mxu0  ;;  %v363_v49 = vsel %vm362_vm2, %v354_v44, -1e+30 }
 0x2be   :  { %365 = vmax.xlane.f32.xlu0 %v363_v49 }
 0x2bf   :  { %v364_v50 = vsel %vm362_vm2, %v357_v47, -1e+30 }
 0x2c2   :  { %367 = vmax.xlane.f32.xlu0 %v364_v50 }
 0x34b   :  { %v366_v51 = vpop.xlane.xlu0 %365 }
 0x34c   :  { %v369_v52 = vsub.f32 %v363_v49, %v366_v51 }
 0x34e   :  { %v371_v53 = vmul.f32 1.442695, %v369_v52 }
 0x34f   :  { %v368_v54 = vpop.xlane.xlu0 %367 }
 0x350   :  { %v370_v55 = vsub.f32 %v364_v50, %v368_v54  ;;  %510 = vpow2.f32 %v371_v53 }
 0x352   :  { %v373_v56 = vmul.f32 1.442695, %v370_v55 }
 0x354   :  { %512 = vpow2.f32 %v373_v56 }
 0x35a   :  { %v511_v57 = vpop.eup %510 }
 0x35b   :  { %375 = vadd.xlane.f32.xlu1 %v511_v57 }
 0x35e   :  { %v513_v58 = vpop.eup %512 }
 0x35f   :  { %377 = vadd.xlane.f32.xlu1 %v513_v58 }
 0x3e8   :  { %v376_v59 = vpop.xlane.xlu1 %375 }
 0x3e9   :  { %514 = vlog2.f32 %v376_v59 }
 0x3ec   :  { %v378_v60 = vpop.xlane.xlu1 %377 }
 0x3ed   :  { %516 = vlog2.f32 %v378_v60 }
 0x3f3   :  { %v515_v61 = vpop.eup %514 }
 0x3f4   :  { %v380_v62 = vmul.f32 0.6931472, %v515_v61 }
 0x3f6   :  { %v383_v63 = vsub.f32 %v369_v52, %v380_v62 }
 0x3f7   :  { %v517_v0 = vpop.eup %516 }
 0x3f8   :  { %385 = vst [vmem:[%s691_s7] sm:$0xff] %v383_v63  ;;  %v382_v1 = vmul.f32 0.6931472, %v517_v0 }
 0x3fa   :  { %v384_v2 = vsub.f32 %v370_v55, %v382_v1 }
 0x3fc   :  { %386 = vst [vmem:[%s691_s7 + $0x8] sm:$0xff] %v384_v2 }
 0x3fd   :  { %391 = vsyncpa [#allocation3], 1 }
 0x3fe   :  { %392 = vsyncpa [#allocation5], 1 }

</bundles_post_ra>
